<compile_context>
chip_gen: v6e
topology: v6e:2x2x1
jax: 0.10.0
libtpu: 0.0.40
codegen_flags: <defaults>
</compile_context>

<pallas_src>
import functools

import jax
import jax.numpy as jnp
from jax.experimental import pallas as pl
from jax.experimental.pallas import tpu as pltpu

_LANE = 128
_SMALL_FALLBACK_BYTES = 8 * 1024 * 1024  # single-block fallback cap


def _identity_kernel(x_ref, o_ref):
    # Empty Sequential hot path: pass-through copy in VMEM.
    o_ref[...] = x_ref[...]


def _identity_copy_2d(x2d):
    """Lane-dense aliased identity copy of a 2D (rows, lane-multiple) array."""
    rows, lane = x2d.shape
    dtype_bytes = jnp.dtype(x2d.dtype).itemsize

    # Target ~2 MiB per tile: 4 live buffers (double-buffered in + out) stay
    # well under the default scoped VMEM limit (32 MiB) on v5e/v6e/v7x.
    target_rows = max(8, (2 * 1024 * 1024) // (lane * dtype_bytes))

    block_rows = rows
    if rows > target_rows:
        # Largest divisor of rows that is <= target_rows and a multiple of 8.
        start = target_rows - (target_rows % 8)
        for cand in range(start, 7, -8):
            if rows % cand == 0:
                block_rows = cand
                break

    num_blocks = rows // block_rows

    return pl.pallas_call(
        _identity_kernel,
        out_shape=jax.ShapeDtypeStruct((rows, lane), x2d.dtype),
        grid=(num_blocks,),
        in_specs=[pl.BlockSpec((block_rows, lane), lambda i: (i, 0))],
        out_specs=pl.BlockSpec((block_rows, lane), lambda i: (i, 0)),
        input_output_aliases={0: 0},
        compiler_params=pltpu.CompilerParams(
            dimension_semantics=("parallel",)
        ),
    )(x2d)


def _identity_copy_full_block(x2d):
    """Single full-array block copy (block shape == array shape is always legal)."""
    return pl.pallas_call(
        _identity_kernel,
        out_shape=jax.ShapeDtypeStruct(x2d.shape, x2d.dtype),
        grid=(1,),
        in_specs=[pl.BlockSpec(x2d.shape, lambda i: (0, 0))],
        out_specs=pl.BlockSpec(x2d.shape, lambda i: (0, 0)),
        input_output_aliases={0: 0},
    )(x2d)


@functools.partial(jax.jit, static_argnames=())
def prediction_model_forward(x):
    """Forward pass of PredictionModel (empty nn.Sequential == identity)."""
    total = x.size
    dtype_bytes = jnp.dtype(x.dtype).itemsize

    if total % _LANE != 0:
        # No lane-dense layout without padding. For small arrays still emit a
        # single full-block Pallas copy; otherwise the module is the identity,
        # so return x directly (no HBM round-trip at all).
        if total * dtype_bytes <= _SMALL_FALLBACK_BYTES:
            out2d = _identity_copy_full_block(x.reshape(1, total))
            return out2d.reshape(x.shape)
        # TODO(synk): padded tiled copy for huge non-128-multiple inputs.
        return x

    # Flatten to (rows, lane): lane is a multiple of 128; widen lanes while
    # rows stays a multiple of 8 for full sublane utilization.
    rows = total // _LANE
    lane = _LANE
    while lane < 2048 and rows % 16 == 0:
        lane *= 2
        rows //= 2

    x2d = x.reshape(rows, lane)          # glue reshape in plain JAX
    out2d = _identity_copy_2d(x2d)
    return out2d.reshape(x.shape)


if __name__ == "__main__":
    key = jax.random.PRNGKey(0)
    # Small NCHW input consistent with "satellite imagery" conv-style input.
    x = jax.random.normal(key, (2, 4, 16, 16), dtype=jnp.float32)

    y = prediction_model_forward(x)
    jax.block_until_ready(y)

    # Identity semantics check against the reference (forward(x) == x).
    assert y.shape == x.shape
    assert y.dtype == x.dtype
    assert bool(jnp.all(y == x))

    print("KERNEL_OK")
</pallas_src>

<mosaic_0001>
module attributes {stable_mosaic.version = 11 : i64} {
  func.func @_identity_kernel(%arg0: i32, %arg1: memref<8x256xf32, #tpu.memory_space<vmem>>, %arg2: memref<8x256xf32, #tpu.memory_space<vmem>>) attributes {dimension_semantics = [#tpu.dimension_semantics<parallel>], iteration_bounds = array<i64: 1>, scalar_prefetch = 0 : i64, scratch_operands = 0 : i64, tpu.core_type = #tpu.core_type<tc>, window_params = [{transform_indices = @transform_0, window_bounds = array<i64: 8, 256>}, {transform_indices = @transform_1, window_bounds = array<i64: 8, 256>}]} {
    %c0 = arith.constant 0 : index
    %c0_0 = arith.constant 0 : index
    %0 = vector.load %arg1[%c0, %c0_0] : memref<8x256xf32, #tpu.memory_space<vmem>>, vector<8x256xf32>
    %c0_1 = arith.constant 0 : index
    %c0_2 = arith.constant 0 : index
    %1 = vector.load %arg2[%c0_1, %c0_2] : memref<8x256xf32, #tpu.memory_space<vmem>>, vector<8x256xf32>
    tpu.vector_store %arg2[%c0_1, %c0_2], %0 {strides = array<i32>} : memref<8x256xf32, #tpu.memory_space<vmem>>, vector<8x256xf32>,
    return
  }
  func.func @transform_0(%arg0: i32) -> (i32, i32) {
    %c0_i32 = arith.constant 0 : i32
    %c0_i32_0 = arith.constant 0 : i32
    return %arg0, %c0_i32 : i32, i32
  }
  func.func @transform_1(%arg0: i32) -> (i32, i32) {
    %c0_i32 = arith.constant 0 : i32
    %c0_i32_0 = arith.constant 0 : i32
    return %arg0, %c0_i32 : i32, i32
  }
}

</mosaic_0001>

<bundles_post_ra>
// kernel: prediction_model_forward.1
= control target key start
LH: loop header
LB: loop body
LE: loop exit
PB: predicated region body
PF: predicated region fallthrough
CT: control target
= control target key end

     0   :  { %s38_s0 = inlined_call_operand.vmem [shape: f32[8,256], index: 0, kind: input, shape index: {}, may-alias: {0,1}]   ;;  %s39_s1 = inlined_call_operand.vmem [shape: f32[8,256], index: 1, kind: output, shape index: {}, may-alias: {0,1}]  }
   0x1   :  { %v8_v0 = vld [vmem:[%s38_s0] sm:$0xff]  ;;  %v9_v1 = vld [vmem:[%s38_s0 + $0x8] sm:$0xff] }
   0x2   :  { %10 = vst [vmem:[%s39_s1] sm:$0xff] %v8_v0  ;;  %11 = vst [vmem:[%s39_s1 + $0x8] sm:$0xff] %v9_v1 }

</bundles_post_ra>
